<compile_context>
chip_gen: v6e
topology: v6e:2x2x1
jax: 0.10.0
libtpu: 0.0.40
codegen_flags: <defaults>
</compile_context>

<pallas_src>
import functools
import math

import jax
import jax.numpy as jnp
from jax.experimental import pallas as pl
from jax.experimental.pallas import tpu as pltpu


def _round_up(x, m):
    return ((x + m - 1) // m) * m


def _cdiv(a, b):
    return (a + b - 1) // b


def critic_kernel(state_ref, action_ref,
                  w1_ref, b1_ref,
                  w2a_ref, w2b_ref, b2_ref,
                  w3_ref, b3_ref,
                  out_ref):
    # bf16 casts are free in-register VPU work; accumulation stays f32.
    s = state_ref[...].astype(jnp.bfloat16)
    a = action_ref[...].astype(jnp.bfloat16)

    # fc1 + ReLU.
    h1 = jnp.dot(s, w1_ref[...], preferred_element_type=jnp.float32) + b1_ref[...]
    h1 = jnp.maximum(h1, 0.0)

    # fc2 on cat([h1, action]) folded into two matmuls (exact), + ReLU.
    # (Could be fused further into one matmul / VPU FMAs, but the MXU is far
    # from saturated at these dims, so keep the simple exact fold.)
    h2 = (jnp.dot(h1.astype(jnp.bfloat16), w2a_ref[...],
                  preferred_element_type=jnp.float32)
          + jnp.dot(a, w2b_ref[...], preferred_element_type=jnp.float32)
          + b2_ref[...])
    h2 = jnp.maximum(h2, 0.0)

    # fc3 (single output unit): VPU multiply + cross-lane reduce, then flip the
    # (tb, 1) column into a lane-dense (1, tb) row (cheap XLU transpose) so the
    # writeback uses full-width unmasked stores.
    q = jnp.sum(h2 * w3_ref[...], axis=-1, keepdims=True) + b3_ref[0]   # (tb, 1) f32
    out_ref[...] = q.T[None].astype(out_ref.dtype)                      # (1, 1, tb)


@functools.partial(jax.jit, static_argnames=("block_rows",))
def critic_forward(state, action, params, block_rows=2048):
    """Full Critic forward in one Pallas call, tiled over the batch dimension."""
    w1, b1, w2a, w2b, b2, w3, b3 = params
    B, S = state.shape
    A = action.shape[1]
    F1 = w1.shape[1]
    F2 = w2a.shape[1]

    # Row tile: multiple of 16 sublanes, as big as possible (few grid steps),
    # but at least 2 tiles when the batch allows so v7x's two TensorCores both
    # get work.  block_rows is clamped rather than trusted.
    cap = max(16, _round_up(block_rows, 16))
    if B > 16:
        tb = min(cap, _round_up(_cdiv(B, 2), 16))
    else:
        tb = min(cap, _round_up(B, 16))
    num_tiles = _cdiv(B, tb)

    def row_spec(cols):
        # Batch-tiled; the last block may be ragged (masked edge DMA).
        return pl.BlockSpec((tb, cols), lambda i: (i, 0))

    def resident_spec(rows, cols):
        # Same block every grid step -> stays VMEM-resident.
        return pl.BlockSpec((rows, cols), lambda i: (0, 0))

    flops = 2 * B * (S * F1 + (F1 + A) * F2 + F2)
    bytes_accessed = (B * (S + A) * 4                      # f32 inputs, read once
                      + num_tiles * tb * 4                 # lane-dense f32 output
                      + 2 * (S * F1 + F1 * F2 + A * F2)    # bf16 weights
                      + 4 * (F1 + F2 + F2 + 1))            # f32 biases + w3 row

    out = pl.pallas_call(
        critic_kernel,
        out_shape=jax.ShapeDtypeStruct((num_tiles, 1, tb), jnp.float32),
        grid=(num_tiles,),
        in_specs=[
            row_spec(S),             # state   (batch-tiled, f32)
            row_spec(A),             # action  (batch-tiled, f32)
            resident_spec(S, F1),    # w1  (bf16)
            resident_spec(1, F1),    # b1  (f32)
            resident_spec(F1, F2),   # w2a (fc2 weight rows for h1, bf16)
            resident_spec(A, F2),    # w2b (fc2 weight rows for action, bf16)
            resident_spec(1, F2),    # b2  (f32)
            resident_spec(1, F2),    # w3  (fc3 weight as a row, f32, VPU path)
            pl.BlockSpec(memory_space=pltpu.MemorySpace.SMEM),  # b3 scalar
        ],
        out_specs=pl.BlockSpec((1, 1, tb), lambda i: (i, 0, 0)),
        compiler_params=pltpu.CompilerParams(
            # v7x: shard the batch axis across both TensorCores; harmless on
            # single-TC v5e/v6e.
            dimension_semantics=("parallel",),
        ),
        cost_estimate=pl.CostEstimate(
            flops=flops, transcendentals=0, bytes_accessed=bytes_accessed),
    )(state, action, w1, b1, w2a, w2b, b2, w3, b3)

    # (num_tiles, 1, tb) lane-dense slab -> (B, 1); ragged tail rows discarded.
    return out.reshape(-1)[:B].reshape(B, 1)


def init_params(key, state_size, action_size, fc1_units, fc2_units):
    """Deterministic init mirroring the PyTorch module's reset_parameters().

    fc1/fc2 weights: uniform(-1/sqrt(fan_in), 1/sqrt(fan_in))   (hidden_init)
    fc3 weight:      uniform(-3e-3, 3e-3)
    biases:          PyTorch Linear default uniform(-1/sqrt(fan_in), 1/sqrt(fan_in))
    Matmul weights are stored transposed (in, out) and in bf16; biases and the
    fc3 row (VPU path) stay f32.
    """
    ks = jax.random.split(key, 7)

    def u(k, shape, bound, dtype=jnp.float32):
        return jax.random.uniform(k, shape, jnp.float32, -bound, bound).astype(dtype)

    lim1 = 1.0 / math.sqrt(state_size)
    lim2 = 1.0 / math.sqrt(fc1_units + action_size)
    lim3 = 1.0 / math.sqrt(fc2_units)

    w1 = u(ks[0], (state_size, fc1_units), lim1, jnp.bfloat16)
    b1 = u(ks[1], (1, fc1_units), lim1)
    # fc2 operates on cat([h1, action]); split its weight into the two blocks.
    w2a = u(ks[2], (fc1_units, fc2_units), lim2, jnp.bfloat16)
    w2b = u(ks[3], (action_size, fc2_units), lim2, jnp.bfloat16)
    b2 = u(ks[4], (1, fc2_units), lim2)
    w3 = u(ks[5], (1, fc2_units), 3e-3)      # fc3 weight as a row (f32, VPU path)
    b3 = u(ks[6], (1,), lim3)                # fc3 bias scalar (lives in SMEM)
    return (w1, b1, w2a, w2b, b2, w3, b3)


def critic_reference(state, action, params):
    """Plain-JAX reference doing the identical bf16-input / f32-accum math."""
    w1, b1, w2a, w2b, b2, w3, b3 = params
    s = state.astype(jnp.bfloat16)
    a = action.astype(jnp.bfloat16)
    h1 = jax.nn.relu(jnp.dot(s, w1, preferred_element_type=jnp.float32) + b1)
    h2 = jax.nn.relu(jnp.dot(h1.astype(jnp.bfloat16), w2a,
                             preferred_element_type=jnp.float32)
                     + jnp.dot(a, w2b, preferred_element_type=jnp.float32)
                     + b2)
    return jnp.sum(h2 * w3, axis=-1, keepdims=True) + b3


if __name__ == "__main__":
    # Small shapes consistent with the module's forward; batch=20 with the
    # default block_rows gives tb=16 -> 2 grid steps (megacore split) plus a
    # ragged last block, exercising the no-pad edge handling and the
    # lane-dense output slicing.
    batch = 20
    state_size = 16
    action_size = 4
    fc1_units = 64
    fc2_units = 32

    key = jax.random.PRNGKey(0)
    k_state, k_action, k_params = jax.random.split(key, 3)

    state = jax.random.normal(k_state, (batch, state_size), jnp.float32)
    action = jax.random.normal(k_action, (batch, action_size), jnp.float32)
    params = init_params(k_params, state_size, action_size, fc1_units, fc2_units)

    q = critic_forward(state, action, params)
    q = jax.block_until_ready(q)

    q_ref = critic_reference(state, action, params)
    assert q.shape == (batch, 1), q.shape
    assert jnp.allclose(q, q_ref, atol=2e-2, rtol=2e-2), (q, q_ref)

    print("KERNEL_OK")
</pallas_src>

<mosaic_0001>
module attributes {stable_mosaic.version = 11 : i64} {
  func.func @critic_kernel(%arg0: i32, %arg1: memref<16x16xf32, #tpu.memory_space<vmem>>, %arg2: memref<16x4xf32, #tpu.memory_space<vmem>>, %arg3: memref<16x64xbf16, #tpu.memory_space<vmem>>, %arg4: memref<1x64xf32, #tpu.memory_space<vmem>>, %arg5: memref<64x32xbf16, #tpu.memory_space<vmem>>, %arg6: memref<4x32xbf16, #tpu.memory_space<vmem>>, %arg7: memref<1x32xf32, #tpu.memory_space<vmem>>, %arg8: memref<1x32xf32, #tpu.memory_space<vmem>>, %arg9: memref<1xf32, #tpu.memory_space<smem>>, %arg10: memref<1x1x16xf32, #tpu.memory_space<vmem>>) attributes {dimension_semantics = [#tpu.dimension_semantics<parallel>], iteration_bounds = array<i64: 2>, scalar_prefetch = 0 : i64, scratch_operands = 0 : i64, tpu.core_type = #tpu.core_type<tc>, window_params = [{transform_indices = @transform_0, window_bounds = array<i64: 16, 16>}, {transform_indices = @transform_1, window_bounds = array<i64: 16, 4>}, {pipeline_mode = #tpu.pipeline_mode<synchronous>, transform_indices = @transform_2, window_bounds = array<i64: 16, 64>}, {pipeline_mode = #tpu.pipeline_mode<synchronous>, transform_indices = @transform_3, window_bounds = array<i64: 1, 64>}, {pipeline_mode = #tpu.pipeline_mode<synchronous>, transform_indices = @transform_4, window_bounds = array<i64: 64, 32>}, {pipeline_mode = #tpu.pipeline_mode<synchronous>, transform_indices = @transform_5, window_bounds = array<i64: 4, 32>}, {pipeline_mode = #tpu.pipeline_mode<synchronous>, transform_indices = @transform_6, window_bounds = array<i64: 1, 32>}, {pipeline_mode = #tpu.pipeline_mode<synchronous>, transform_indices = @transform_7, window_bounds = array<i64: 1, 32>}, {transform_indices = @transform_8, window_bounds = array<i64: 1>}, {transform_indices = @transform_9, window_bounds = array<i64: 1, 1, 16>}]} {
    %c0 = arith.constant 0 : index
    %c0_0 = arith.constant 0 : index
    %0 = vector.load %arg1[%c0, %c0_0] : memref<16x16xf32, #tpu.memory_space<vmem>>, vector<16x16xf32>
    %1 = arith.truncf %0 : vector<16x16xf32> to vector<16x16xbf16>
    %c0_1 = arith.constant 0 : index
    %c0_2 = arith.constant 0 : index
    %2 = vector.load %arg2[%c0_1, %c0_2] : memref<16x4xf32, #tpu.memory_space<vmem>>, vector<16x4xf32>
    %3 = arith.truncf %2 : vector<16x4xf32> to vector<16x4xbf16>
    %c0_3 = arith.constant 0 : index
    %c0_4 = arith.constant 0 : index
    %4 = vector.load %arg3[%c0_3, %c0_4] : memref<16x64xbf16, #tpu.memory_space<vmem>>, vector<16x64xbf16>
    %cst = arith.constant dense<0.000000e+00> : vector<16x64xf32>
    %5 = tpu.matmul %1, %4, %cst {dimension_numbers = #tpu.dot_dimension_numbers<[1], [0], [0], [1], [0, 0, 1, 1], [], []>} : vector<16x16xbf16>, vector<16x64xbf16>, vector<16x64xf32> -> vector<16x64xf32>
    %c0_5 = arith.constant 0 : index
    %c0_6 = arith.constant 0 : index
    %6 = vector.load %arg4[%c0_5, %c0_6] : memref<1x64xf32, #tpu.memory_space<vmem>>, vector<1x64xf32>
    %7 = vector.broadcast %6 : vector<1x64xf32> to vector<16x64xf32>
    %8 = arith.addf %5, %7 : vector<16x64xf32>
    %cst_7 = arith.constant 0.000000e+00 : f32
    %9 = vector.broadcast %cst_7 : f32 to vector<16x64xf32>
    %10 = arith.maximumf %8, %9 : vector<16x64xf32>
    %11 = arith.truncf %10 : vector<16x64xf32> to vector<16x64xbf16>
    %c0_8 = arith.constant 0 : index
    %c0_9 = arith.constant 0 : index
    %12 = vector.load %arg5[%c0_8, %c0_9] : memref<64x32xbf16, #tpu.memory_space<vmem>>, vector<64x32xbf16>
    %cst_10 = arith.constant dense<0.000000e+00> : vector<16x32xf32>
    %13 = tpu.matmul %11, %12, %cst_10 {dimension_numbers = #tpu.dot_dimension_numbers<[1], [0], [0], [1], [0, 0, 1, 1], [], []>} : vector<16x64xbf16>, vector<64x32xbf16>, vector<16x32xf32> -> vector<16x32xf32>
    %c0_11 = arith.constant 0 : index
    %c0_12 = arith.constant 0 : index
    %14 = vector.load %arg6[%c0_11, %c0_12] : memref<4x32xbf16, #tpu.memory_space<vmem>>, vector<4x32xbf16>
    %cst_13 = arith.constant dense<0.000000e+00> : vector<16x32xf32>
    %15 = tpu.matmul %3, %14, %cst_13 {dimension_numbers = #tpu.dot_dimension_numbers<[1], [0], [0], [1], [0, 0, 1, 1], [], []>} : vector<16x4xbf16>, vector<4x32xbf16>, vector<16x32xf32> -> vector<16x32xf32>
    %16 = arith.addf %13, %15 : vector<16x32xf32>
    %c0_14 = arith.constant 0 : index
    %c0_15 = arith.constant 0 : index
    %17 = vector.load %arg7[%c0_14, %c0_15] : memref<1x32xf32, #tpu.memory_space<vmem>>, vector<1x32xf32>
    %18 = vector.broadcast %17 : vector<1x32xf32> to vector<16x32xf32>
    %19 = arith.addf %16, %18 : vector<16x32xf32>
    %cst_16 = arith.constant 0.000000e+00 : f32
    %20 = vector.broadcast %cst_16 : f32 to vector<16x32xf32>
    %21 = arith.maximumf %19, %20 : vector<16x32xf32>
    %c0_17 = arith.constant 0 : index
    %c0_18 = arith.constant 0 : index
    %22 = vector.load %arg8[%c0_17, %c0_18] : memref<1x32xf32, #tpu.memory_space<vmem>>, vector<1x32xf32>
    %23 = vector.broadcast %22 : vector<1x32xf32> to vector<16x32xf32>
    %24 = arith.mulf %21, %23 : vector<16x32xf32>
    %cst_19 = arith.constant dense<0.000000e+00> : vector<16xf32>
    %25 = vector.multi_reduction <add>, %24, %cst_19 [1] : vector<16x32xf32> to vector<16xf32>
    %26 = vector.shape_cast %25 : vector<16xf32> to vector<16x1xf32>
    %c0_20 = arith.constant 0 : index
    %27 = memref.load %arg9[%c0_20] : memref<1xf32, #tpu.memory_space<smem>>
    %28 = vector.broadcast %27 : f32 to vector<16x1xf32>
    %29 = arith.addf %26, %28 : vector<16x1xf32>
    %30 = tpu.transpose %29, [1, 0] : vector<16x1xf32> -> vector<1x16xf32>
    %31 = vector.shape_cast %30 : vector<1x16xf32> to vector<1x1x16xf32>
    %c0_21 = arith.constant 0 : index
    %c0_22 = arith.constant 0 : index
    %c0_23 = arith.constant 0 : index
    %32 = vector.load %arg10[%c0_21, %c0_22, %c0_23] : memref<1x1x16xf32, #tpu.memory_space<vmem>>, vector<1x1x16xf32>
    tpu.vector_store %arg10[%c0_21, %c0_22, %c0_23], %31 {strides = array<i32>} : memref<1x1x16xf32, #tpu.memory_space<vmem>>, vector<1x1x16xf32>,
    return
  }
  func.func @transform_0(%arg0: i32) -> (i32, i32) {
    %c0_i32 = arith.constant 0 : i32
    %c0_i32_0 = arith.constant 0 : i32
    return %arg0, %c0_i32 : i32, i32
  }
  func.func @transform_1(%arg0: i32) -> (i32, i32) {
    %c0_i32 = arith.constant 0 : i32
    %c0_i32_0 = arith.constant 0 : i32
    return %arg0, %c0_i32 : i32, i32
  }
  func.func @transform_2(%arg0: i32) -> (i32, i32) {
    %c0_i32 = arith.constant 0 : i32
    %c0_i32_0 = arith.constant 0 : i32
    %c0_i32_1 = arith.constant 0 : i32
    return %c0_i32, %c0_i32_0 : i32, i32
  }
  func.func @transform_3(%arg0: i32) -> (i32, i32) {
    %c0_i32 = arith.constant 0 : i32
    %c0_i32_0 = arith.constant 0 : i32
    %c0_i32_1 = arith.constant 0 : i32
    return %c0_i32, %c0_i32_0 : i32, i32
  }
  func.func @transform_4(%arg0: i32) -> (i32, i32) {
    %c0_i32 = arith.constant 0 : i32
    %c0_i32_0 = arith.constant 0 : i32
    %c0_i32_1 = arith.constant 0 : i32
    return %c0_i32, %c0_i32_0 : i32, i32
  }
  func.func @transform_5(%arg0: i32) -> (i32, i32) {
    %c0_i32 = arith.constant 0 : i32
    %c0_i32_0 = arith.constant 0 : i32
    %c0_i32_1 = arith.constant 0 : i32
    return %c0_i32, %c0_i32_0 : i32, i32
  }
  func.func @transform_6(%arg0: i32) -> (i32, i32) {
    %c0_i32 = arith.constant 0 : i32
    %c0_i32_0 = arith.constant 0 : i32
    %c0_i32_1 = arith.constant 0 : i32
    return %c0_i32, %c0_i32_0 : i32, i32
  }
  func.func @transform_7(%arg0: i32) -> (i32, i32) {
    %c0_i32 = arith.constant 0 : i32
    %c0_i32_0 = arith.constant 0 : i32
    %c0_i32_1 = arith.constant 0 : i32
    return %c0_i32, %c0_i32_0 : i32, i32
  }
  func.func @transform_8(%arg0: i32) -> i32 {
    %c0_i32 = arith.constant 0 : i32
    %c0_i32_0 = arith.constant 0 : i32
    return %c0_i32 : i32
  }
  func.func @transform_9(%arg0: i32) -> (i32, i32, i32) {
    %c0_i32 = arith.constant 0 : i32
    %c0_i32_0 = arith.constant 0 : i32
    %c0_i32_1 = arith.constant 0 : i32
    return %arg0, %c0_i32, %c0_i32_0 : i32, i32, i32
  }
}

</mosaic_0001>

<bundles_post_ra>
// kernel: critic_forward.1
= control target key start
LH: loop header
LB: loop body
LE: loop exit
PB: predicated region body
PF: predicated region fallthrough
CT: control target
= control target key end

     0   :  { %s848_s11 = smov 0   ;;  %s900_s0 = inlined_call_operand.vmem [shape: f32[20,16], index: 0, kind: input, shape index: {}]   ;;  %s901_s1 = inlined_call_operand.vmem [shape: f32[20,4], index: 1, kind: input, shape index: {}]   ;;  %s902_s2 = inlined_call_operand.vmem [shape: bf16[16,64], index: 2, kind: input, shape index: {}]   ;;  %s903_s3 = inlined_call_operand.vmem [shape: f32[1,64], index: 3, kind: input, shape index: {}]   ;;  %s904_s4 = inlined_call_operand.vmem [shape: bf16[64,32], index: 4, kind: input, shape index: {}]   ;;  %s905_s5 = inlined_call_operand.vmem [shape: bf16[4,32], index: 5, kind: input, shape index: {}]   ;;  %s906_s6 = inlined_call_operand.vmem [shape: f32[1,32], index: 6, kind: input, shape index: {}]   ;;  %s907_s7 = inlined_call_operand.vmem [shape: f32[1,32], index: 7, kind: input, shape index: {}]   ;;  %s908_s8 = inlined_call_operand.<no memory space> [shape: f32[1], index: 8, kind: input, shape index: {}]   ;;  %s909_s9 = inlined_call_operand.vmem [shape: f32[2,1,16], index: 9, kind: output, shape index: {}]  }
   0x1   :  { %14 = sst [smem:[#allocation2]] %s908_s8 }
   0x2 LB: > { %s854_s12 = sadd.s32 4294967295, %s791_s11   ;;  %p719_p0 = scmp.ge.s32.totalorder %s791_s11, 1  ;;  %s791_s11 = sphi %s848_s11, %s20_s11  }
   0x3   : > { %p316_p1 = scmp.lt.s32.totalorder %s791_s11, 3 }
   0x5   : > { %p317_p2 = pnand %p719_p0, %p316_p1 }
   0x6   : > { %s720_s8 = sshll.u32 (!%p317_p2), %s854_s12, 1  ;;  %s618_s18 = sld [smem:[#allocation2]] (!%p317_p2) }
   0x7   : > { %320 = sbr.rel (%p317_p2) target bundleno = 689 (0x2b1), region = 56  ;;  %p368_p3 = scmp.lt.s32.totalorder (!%p317_p2), %s720_s8, 2 }
   0x8   : > { %p391_p4 = scmp.lt.s32.totalorder (!%p317_p2), %s854_s12, 1 }
   0xc   : > { %v780_v0 = vld [vmem:[%s902_s2] sm:$0xff]   ;;  %v793_v1 = vmov 0.0   ;;  %v781_v2 = vld [vmem:[%s904_s4 + $0x18] sm:$0xff]   ;;  %vm794_vm0 = vmmov 0   ;;  %s911_s8 = smov (!%p368_p3, %s720_s8), 2  ;;  %vm416_vm1 = vcmask 130048   ;;  %v619_v44 = vstv %s618_s18 }
   0xd   : > { %746 = vmatprep.subr.bf16.mxu1 %v793_v1  ;;  %758 = vmatprep.subr.bf16.mxu0 %v793_v1  ;;  %s721_s17 = sshll.u32 %s911_s8, 3  ;;  %v782_v6 = vld [vmem:[%s904_s4 + $0x10] sm:$0xff]   ;;  %v472_v9 = vld [vmem:[%s905_s5] sm:$0x3]  ;;  %vm477_vm2 = vcmask 1041408   ;;  %v783_v11 = vld [vmem:[%s904_s4 + $0x8] sm:$0xff]  }
   0xe   : > { %747 = vmatpush3.bf16.msra.mxu1 %v780_v0  ;;  %748 = vmatprep.mubr.msk.bf16.mxu1 %vm794_vm0, %v793_v1  ;;  %s371_s20 = scalar_lea.vmem %s900_s0, %s721_s17  ;;  %s385_s23 = scalar_lea.vmem %s901_s1, %s721_s17  ;;  %v479_v10 = vsel %vm477_vm2, %v472_v9, 0  ;;  %vm473_vm3 = vcmask 31744   ;;  %v784_v13 = vld [vmem:[%s904_s4] sm:$0xff]   ;;  %vm546_vm4 = vcmask 523264   ;;  %vm611_vm5 = vcmask 261120  }
   0xf   : > { %759 = vmatpush3.bf16.msra.mxu0 %v781_v2  ;;  %752 = vmatprep.subr.bf16.mxu1 %v793_v1  ;;  %v395_v3 = vld [vmem:[%s371_s20] sm:$0xff]  ;;  %v396_v4 = vld [vmem:[%s371_s20 + $0x8] sm:$0xff]  ;;  %s913_s12 = smov (!%p391_p4, %s854_s12), 1  ;;  %vm654_vm6 = vcmask 122880  }
  0x10   : > { %760 = vmatprep.subr.bf16.mxu0 %v793_v1  ;;  %766 = vmatprep.mubr.msk.bf16.mxu0 %vm794_vm0, %v793_v1  ;;  %v397_v5 = vpack.c.bf16 %v396_v4, %v395_v3  ;;  %v398_v7 = vld [vmem:[%s385_s23] sm:$0xff]  ;;  %v399_v8 = vld [vmem:[%s385_s23 + $0x8] sm:$0xff]  ;;  %s393_s21 = scalar_lea.vmem %s909_s9, %s913_s12 }
  0x11   : > { %v400_v12 = vpack.c.bf16 %v399_v8, %v398_v7  ;;  %v724_v14 = vld [vmem:[%s903_s3] ss:$0 sm:$0xff] }
  0x12   : > { %749 = vmatmul.mubr.msk.bf16.vlgmr.msra.gmra.mxu1 %vm416_vm1, %v397_v5  ;;  %v733_v29 = vld [vmem:[%s906_s6] ss:$0 sm:$0xff] }
  0x13   : > { %754 = vmatprep.mubr.msk.bf16.mxu1 %vm794_vm0, %v793_v1  ;;  %761 = vmatpush3.bf16.msra.mxu0 %v782_v6  ;;  %v734_v34 = vld [vmem:[%s907_s7] ss:$0 sm:$0xff] }
  0x14   : > { %762 = vmatprep.subr.bf16.mxu0 %v793_v1  ;;  %753 = vmatpush3.bf16.msra.mxu1 %v479_v10 }
  0x17   : > { %763 = vmatpush3.bf16.msra.mxu0 %v783_v11 }
  0x18   : > { %764 = vmatprep.subr.bf16.mxu0 %v793_v1 }
  0x1a   : > { %755 = vmatmul.mubr.msk.bf16.vlgmr.msra.gmra.mxu1 %vm473_vm3, %v400_v12 }
  0x1b   : > { %765 = vmatpush3.bf16.msra.mxu0 %v784_v13 }
  0xd2   : > { %v454_v15 = vpop.f32.mrf.mxu1 }
  0xd3   : > { %v455_v17 = vadd.f32 %v724_v14, %v454_v15 }
  0xd4   : > { %v750_v16 = vpop.f32.mrf.mxu1 }
  0xd5   : > { %v461_v21 = vmax.f32 %v455_v17, 0.0 }
  0xd6   : > { %v457_v18 = vpop.f32.mrf.mxu1 }
  0xd7   : > { %v458_v19 = vadd.f32 %v724_v14, %v457_v18 }
  0xd8   : > { %v751_v20 = vpop.f32.mrf.mxu1 }
  0xd9   : > { %v462_v22 = vmax.f32 %v458_v19, 0.0 }
  0xda   : > { %v515_v24 = vpop.f32.mrf.mxu1 }
  0xdb   : > { %v463_v23 = vpack.c.bf16 %v462_v22, %v461_v21 }
  0xdc   : > { %v756_v25 = vpop.f32.mrf.mxu1 }
  0xdd   : > { %767 = vmatmul.mubr.msk.bf16.vlgmr.msra.gmra.mxu0 %vm546_vm4, %v463_v23 }
  0xde   : > { %v518_v26 = vpop.f32.mrf.mxu1 }
  0xe0   : > { %v757_v27 = vpop.f32.mrf.mxu1 }
 0x19d   : > { %v584_v28 = vpop.f32.mrf.mxu0 }
 0x19e   : > { %v585_v30 = vadd.f32 %v584_v28, %v515_v24 }
 0x19f   : > { %v768_v31 = vpop.f32.mrf.mxu0 }
 0x1a0   : > { %v598_v32 = vadd.f32 %v733_v29, %v585_v30 }
 0x1a1   : > { %v587_v33 = vpop.f32.mrf.mxu0 }
 0x1a2   : > { %v600_v35 = vmax.f32 %v598_v32, 0.0  ;;  %v588_v36 = vadd.f32 %v587_v33, %v518_v26 }
 0x1a3   : > { %v769_v37 = vpop.f32.mrf.mxu0 }
 0x1a4   : > { %v599_v38 = vadd.f32 %v733_v29, %v588_v36  ;;  %v609_v39 = vmul.f32 %v734_v34, %v600_v35 }
 0x1a6   : > { %v601_v40 = vmax.f32 %v599_v38, 0.0  ;;  %v612_v41 = vsel %vm611_vm5, %v609_v39, 0.0 }
 0x1a7   : > { %613 = vadd.xlane.f32.xlu0 %v612_v41 }
 0x1a8   : > { %v610_v42 = vmul.f32 %v734_v34, %v601_v40 }
 0x1aa   : > { %v615_v43 = vsel %vm611_vm5, %v610_v42, 0.0 }
 0x1ab   : > { %616 = vadd.xlane.f32.xlu0 %v615_v43 }
 0x230   : > { %v614_v45 = vpop.xlane.xlu0 %613 }
 0x231   : > { %v620_v46 = vadd.f32 %v619_v44, %v614_v45 }
 0x233   : > { %622 = vxpose.xlu1.b32.start [1/2] (short) (narrow) %v620_v46, 8 }
 0x234   : > { %v617_v47 = vpop.xlane.xlu0 %616 }
 0x235   : > { %v621_v48 = vadd.f32 %v619_v44, %v617_v47 }
 0x237   : > { %623 = vxpose.xlu1.b32.end [2/2] (short) (narrow) %v621_v48, 8 }
 0x2af   : > { %v638_v49 = vpop.trf.xlu1 }
 0x2b0   : > { %655 = vst.msk [vmem:[%s393_s21] sm:$0x1] %vm654_vm6, %v638_v49 }
 0x2b1 PF: > { %s20_s11 = sadd.s32 1, %s791_s11  }
 0x2b2   : > { %p17_p5 = scmp.ge.s32.totalorder %s20_s11, 4  }
 0x2b4   :  { %19 = sbr.rel (!%p17_p5) target bundleno = 2 (0x2), region = 89 }

</bundles_post_ra>
